<compile_context>
chip_gen: v6e
topology: v6e:2x2x1
jax: 0.10.0
libtpu: 0.0.40
codegen_flags: <defaults>
</compile_context>

<pallas_src>
import functools
import math

import jax
import jax.numpy as jnp
from jax import lax
from jax.experimental import pallas as pl
from jax.experimental.pallas import tpu as pltpu


_NEG_INF = -1e30  # finite "-inf": keeps the online-softmax recurrence NaN-free
_VMEM_LIMIT = 48 * 1024 * 1024


def _pick_tile(dim, preferred):
    """Largest preferred tile that divides `dim`, else the full extent."""
    for t in preferred:
        if dim % t == 0:
            return t
    return dim


def _pick_head_group(h, d_k):
    """Smallest head-group G (dividing h) whose lane width G*d_k is 128-aligned.

    Falls back to all heads (block width == d_model == full last dim, always a
    legal BlockSpec)."""
    for g in range(1, h + 1):
        if h % g == 0 and (g * d_k) % 128 == 0:
            return g
    return h


# ---------------------------------------------------------------------------
# Projections:  y[M, N] = x[M, K] @ w[N, K].T   (nn.Linear, bias=False)
# ---------------------------------------------------------------------------
_NT_DIMNUMS = (((1,), (1,)), ((), ()))  # contract both operands' last dims


def _linear_nt_kernel(x_ref, w_ref, o_ref):
    o_ref[...] = lax.dot_general(
        x_ref[...], w_ref[...], _NT_DIMNUMS,
        preferred_element_type=jnp.float32).astype(o_ref.dtype)


def _linear_nt_acc_kernel(x_ref, w_ref, o_ref, acc_ref):
    @pl.when(pl.program_id(2) == 0)
    def _():
        acc_ref[...] = jnp.zeros_like(acc_ref)

    acc_ref[...] += lax.dot_general(
        x_ref[...], w_ref[...], _NT_DIMNUMS, preferred_element_type=jnp.float32)

    @pl.when(pl.program_id(2) == pl.num_programs(2) - 1)
    def _():
        o_ref[...] = acc_ref[...].astype(o_ref.dtype)


def _linear_nt(x, w):
    M, K = x.shape
    N, K2 = w.shape
    assert K == K2
    tm = _pick_tile(M, (512, 256, 128))
    tn = _pick_tile(N, (512, 256, 128))
    tk = K if K <= 2048 else _pick_tile(K, (1024, 512, 256))

    if tk == K:
        # Single K block: no accumulator scratch, no per-k revisit, one clean write.
        return pl.pallas_call(
            _linear_nt_kernel,
            out_shape=jax.ShapeDtypeStruct((M, N), x.dtype),
            grid_spec=pltpu.PrefetchScalarGridSpec(
                num_scalar_prefetch=0,
                grid=(M // tm, N // tn),
                in_specs=[
                    pl.BlockSpec((tm, K), lambda i, j: (i, 0)),
                    pl.BlockSpec((tn, K), lambda i, j: (j, 0)),
                ],
                out_specs=pl.BlockSpec((tm, tn), lambda i, j: (i, j)),
            ),
            compiler_params=pltpu.CompilerParams(
                dimension_semantics=("parallel", "parallel"),
                vmem_limit_bytes=_VMEM_LIMIT,
            ),
        )(x, w)

    return pl.pallas_call(
        _linear_nt_acc_kernel,
        out_shape=jax.ShapeDtypeStruct((M, N), x.dtype),
        grid_spec=pltpu.PrefetchScalarGridSpec(
            num_scalar_prefetch=0,
            grid=(M // tm, N // tn, K // tk),
            in_specs=[
                pl.BlockSpec((tm, tk), lambda i, j, k: (i, k)),
                pl.BlockSpec((tn, tk), lambda i, j, k: (j, k)),
            ],
            out_specs=pl.BlockSpec((tm, tn), lambda i, j, k: (i, j)),
            scratch_shapes=[pltpu.VMEM((tm, tn), jnp.float32)],
        ),
        compiler_params=pltpu.CompilerParams(
            dimension_semantics=("parallel", "parallel", "arbitrary"),
            vmem_limit_bytes=_VMEM_LIMIT,
        ),
    )(x, w)


# ---------------------------------------------------------------------------
# Fused scaled-dot-product attention (flash / online softmax).
# Q, K, V: [B, S, *] kept in model layout; per-head columns selected via the
# head-group grid axis + static in-kernel lane slices.  mask: [1|B, Sq, Sk] int8.
# ---------------------------------------------------------------------------
def _flash_attn_kernel(*refs, sm_scale, G, d_k, has_mask):
    if has_mask:
        q_ref, k_ref, v_ref, mask_ref, o_ref, m_sc, l_sc, acc_sc = refs
    else:
        q_ref, k_ref, v_ref, o_ref, m_sc, l_sc, acc_sc = refs
        mask_ref = None

    ki = pl.program_id(3)

    @pl.when(ki == 0)
    def _():
        m_sc[...] = jnp.full_like(m_sc, _NEG_INF)
        l_sc[...] = jnp.zeros_like(l_sc)
        acc_sc[...] = jnp.zeros_like(acc_sc)

    q = q_ref[...]          # (tq,  G*d_k) — input dtype feeds the MXU directly
    k = k_ref[...]          # (tkv, G*d_k)
    v = v_ref[...]          # (tkv, G*d_k)
    if has_mask:
        masked = mask_ref[...].astype(jnp.int32) == 0   # hoisted out of the head loop

    for g in range(G):      # static, unrolled loop over the heads of this block
        lo = g * d_k
        qg = q[:, lo:lo + d_k]
        kg = k[:, lo:lo + d_k]
        vg = v[:, lo:lo + d_k]
        # q @ k.T without transposing k (contract last dims on the MXU).
        s = lax.dot_general(qg, kg, _NT_DIMNUMS,
                            preferred_element_type=jnp.float32) * sm_scale
        if has_mask:
            s = jnp.where(masked, _NEG_INF, s)          # masked_fill(mask == 0, -inf)

        m_prev = m_sc[g]
        m_new = jnp.maximum(m_prev, s.max(axis=-1, keepdims=True))
        alpha = jnp.exp(m_prev - m_new)
        p = jnp.exp(s - m_new)
        l_sc[g] = alpha * l_sc[g] + p.sum(axis=-1, keepdims=True)
        acc_sc[g] = alpha * acc_sc[g] + jnp.dot(
            p.astype(vg.dtype), vg, preferred_element_type=jnp.float32)
        m_sc[g] = m_new

    @pl.when(ki == pl.num_programs(3) - 1)
    def _():
        outs = []
        for g in range(G):
            inv_l = pl.reciprocal(l_sc[g], approx=True)   # EUP slot, not a VPU divide
            outs.append(acc_sc[g] * inv_l)
        o_ref[...] = jnp.concatenate(outs, axis=-1).astype(o_ref.dtype)


def _flash_attention(q, k, v, mask, *, h, d_k, sm_scale, head_group,
                     q_col0=0, k_col0=0, v_col0=0):
    B, Sq, _ = q.shape
    Sk = k.shape[1]
    G = head_group
    HG = h // G
    bw = G * d_k                                  # lane width per grid step
    assert q_col0 % bw == 0 and k_col0 % bw == 0 and v_col0 % bw == 0
    qo, ko, vo = q_col0 // bw, k_col0 // bw, v_col0 // bw

    tq = _pick_tile(Sq, (256, 128))
    tkv = _pick_tile(Sk, (512, 256, 128))
    grid = (B, HG, Sq // tq, Sk // tkv)           # KV reduction axis trailing

    has_mask = mask is not None
    in_specs = [
        pl.BlockSpec((None, tq, bw), lambda b, hg, qi, ki: (b, qi, qo + hg)),
        pl.BlockSpec((None, tkv, bw), lambda b, hg, qi, ki: (b, ki, ko + hg)),
        pl.BlockSpec((None, tkv, bw), lambda b, hg, qi, ki: (b, ki, vo + hg)),
    ]
    operands = [q, k, v]
    if has_mask:
        if mask.shape[0] == 1:                    # 2-D mask: broadcast via index_map
            mspec = pl.BlockSpec((None, tq, tkv), lambda b, hg, qi, ki: (0, qi, ki))
        else:                                     # 3-D mask: broadcast over heads only
            mspec = pl.BlockSpec((None, tq, tkv), lambda b, hg, qi, ki: (b, qi, ki))
        in_specs.append(mspec)
        operands.append(mask)

    return pl.pallas_call(
        functools.partial(_flash_attn_kernel, sm_scale=sm_scale, G=G, d_k=d_k,
                          has_mask=has_mask),
        out_shape=jax.ShapeDtypeStruct((B, Sq, h * d_k), q.dtype),
        grid_spec=pltpu.PrefetchScalarGridSpec(
            num_scalar_prefetch=0,
            grid=grid,
            in_specs=in_specs,
            out_specs=pl.BlockSpec((None, tq, bw),
                                   lambda b, hg, qi, ki: (b, qi, hg)),
            scratch_shapes=[
                pltpu.VMEM((G, tq, 1), jnp.float32),    # running max m
                pltpu.VMEM((G, tq, 1), jnp.float32),    # running denom l
                pltpu.VMEM((G, tq, d_k), jnp.float32),  # output accumulator
            ],
        ),
        compiler_params=pltpu.CompilerParams(
            dimension_semantics=("parallel", "parallel", "parallel", "arbitrary"),
            vmem_limit_bytes=_VMEM_LIMIT,
        ),
    )(*operands)


# ---------------------------------------------------------------------------
# Full MultiHeadAttentionBlock forward
# ---------------------------------------------------------------------------
def multi_head_attention_block(q, k, v, mask, w_q, w_k, w_v, w_o, *, h,
                               dropout_p=0.0):
    """Matches MultiHeadAttentionBlock.forward (inference / dropout inactive)."""
    B, Sq, d_model = q.shape
    Sk = k.shape[1]
    assert d_model % h == 0, "d_model is not divisible by h"
    d_k = d_model // h
    G = _pick_head_group(h, d_k)
    aligned = (G * d_k) % 128 == 0

    # ---- Q/K/V projections: x @ W.T directly (no weight transposes in HBM) ----
    if (q is k) and (k is v):
        # Self-attention: fused QKV projection — the activation is read once.
        w_qkv = jnp.concatenate([w_q, w_k, w_v], axis=0)           # [3*d_model, d_model]
        qkv = _linear_nt(q.reshape(B * Sq, d_model), w_qkv)
        qkv = qkv.reshape(B, Sq, 3 * d_model)
        if aligned:
            # Head-group lane width is 128-aligned: the flash kernel indexes
            # straight into the fused QKV tensor via BlockSpec column offsets.
            Qa = Ka = Va = qkv
            qc, kc, vc = 0, d_model, 2 * d_model
        else:
            Qa = qkv[:, :, :d_model]
            Ka = qkv[:, :, d_model:2 * d_model]
            Va = qkv[:, :, 2 * d_model:]
            qc = kc = vc = 0
    else:
        Qa = _linear_nt(q.reshape(B * Sq, d_model), w_q).reshape(B, Sq, d_model)
        Ka = _linear_nt(k.reshape(B * Sk, d_model), w_k).reshape(B, Sk, d_model)
        Va = _linear_nt(v.reshape(B * Sk, d_model), w_v).reshape(B, Sk, d_model)
        qc = kc = vc = 0

    # ---- mask: int8, never batch-materialized for 2-D masks ----
    if mask is None:
        mask3 = None                                               # no-mask kernel variant
    elif mask.ndim == 2:
        mask3 = (mask != 0).astype(jnp.int8)[None, :, :]           # [1, Sq, Sk]
    else:
        mask3 = (mask != 0).astype(jnp.int8)                       # [B, Sq, Sk]
    # TODO(synk): 4-D (per-head) masks are not plumbed; the module only builds 2-D/3-D.

    ctx = _flash_attention(Qa, Ka, Va, mask3, h=h, d_k=d_k,
                           sm_scale=1.0 / math.sqrt(d_k), head_group=G,
                           q_col0=qc, k_col0=kc, v_col0=vc)        # [B, Sq, d_model]

    # TODO(synk): attention-weight dropout is identity here (eval / p=0); training
    #             dropout would use pltpu.prng_seed / prng_random_bits in-kernel.
    # TODO(synk): self.last_attention_weights is not materialized (flash formulation
    #             never builds the full SxS weight matrix).
    # TODO(synk): fully-masked query rows return the mean of V instead of PyTorch's NaN.
    del dropout_p

    out = _linear_nt(ctx.reshape(B * Sq, d_model), w_o)
    return out.reshape(B, Sq, d_model)


# ---------------------------------------------------------------------------
# Plain-JAX reference (same math as the PyTorch forward)
# ---------------------------------------------------------------------------
def _reference(q, k, v, mask, w_q, w_k, w_v, w_o, h):
    B, Sq, d_model = q.shape
    d_k = d_model // h
    hp = jax.lax.Precision.HIGHEST

    def proj(x, w):
        y = jnp.einsum("bsd,ed->bse", x, w, precision=hp)
        return jnp.transpose(y.reshape(B, -1, h, d_k), (0, 2, 1, 3))

    Q, K, V = proj(q, w_q), proj(k, w_k), proj(v, w_v)
    s = jnp.einsum("bhqd,bhkd->bhqk", Q, K, precision=hp) / math.sqrt(d_k)
    if mask is not None:
        m = mask[:, None, :, :] if mask.ndim == 3 else mask[None, None, :, :]
        s = jnp.where(m == 0, -jnp.inf, s)
    a = jax.nn.softmax(s, axis=-1)
    out = jnp.einsum("bhqk,bhkd->bhqd", a, V, precision=hp)
    out = jnp.transpose(out, (0, 2, 1, 3)).reshape(B, Sq, d_model)
    return jnp.einsum("bsd,ed->bse", out, w_o, precision=hp)


if __name__ == "__main__":
    key = jax.random.PRNGKey(0)
    batch, seq, d_model, h = 2, 8, 32, 4

    k0, k1, k2, k3, k4 = jax.random.split(key, 5)
    wscale = 1.0 / math.sqrt(d_model)
    x = jax.random.normal(k0, (batch, seq, d_model), jnp.float32)   # self-attention input
    w_q = jax.random.normal(k1, (d_model, d_model), jnp.float32) * wscale
    w_k = jax.random.normal(k2, (d_model, d_model), jnp.float32) * wscale
    w_v = jax.random.normal(k3, (d_model, d_model), jnp.float32) * wscale
    w_o = jax.random.normal(k4, (d_model, d_model), jnp.float32) * wscale

    # 2-D causal mask (broadcast over batch & heads, like the module's unsqueezes).
    mask = jnp.tril(jnp.ones((seq, seq), dtype=jnp.int32))

    out = multi_head_attention_block(x, x, x, mask, w_q, w_k, w_v, w_o, h=h,
                                     dropout_p=0.0)
    out = jax.block_until_ready(out)

    ref = _reference(x, x, x, mask, w_q, w_k, w_v, w_o, h)
    err = float(jnp.max(jnp.abs(out - ref)))
    assert err < 2e-2, f"mismatch vs reference: max abs err {err}"

    print("KERNEL_OK")
</pallas_src>

<mosaic_0001>
module attributes {stable_mosaic.version = 11 : i64} {
  func.func @_linear_nt_kernel(%arg0: i32, %arg1: i32, %arg2: memref<16x32xf32, #tpu.memory_space<vmem>>, %arg3: memref<96x32xf32, #tpu.memory_space<vmem>>, %arg4: memref<16x96xf32, #tpu.memory_space<vmem>>) attributes {dimension_semantics = [#tpu.dimension_semantics<parallel>, #tpu.dimension_semantics<parallel>], iteration_bounds = array<i64: 1, 1>, scalar_prefetch = 0 : i64, scratch_operands = 0 : i64, tpu.core_type = #tpu.core_type<tc>, window_params = [{transform_indices = @transform_0, window_bounds = array<i64: 16, 32>}, {transform_indices = @transform_1, window_bounds = array<i64: 96, 32>}, {transform_indices = @transform_2, window_bounds = array<i64: 16, 96>}]} {
    %c0 = arith.constant 0 : index
    %c0_0 = arith.constant 0 : index
    %0 = vector.load %arg2[%c0, %c0_0] : memref<16x32xf32, #tpu.memory_space<vmem>>, vector<16x32xf32>
    %c0_1 = arith.constant 0 : index
    %c0_2 = arith.constant 0 : index
    %1 = vector.load %arg3[%c0_1, %c0_2] : memref<96x32xf32, #tpu.memory_space<vmem>>, vector<96x32xf32>
    %cst = arith.constant dense<0.000000e+00> : vector<16x96xf32>
    %2 = tpu.matmul %0, %1, %cst {dimension_numbers = #tpu.dot_dimension_numbers<[1], [1], [0], [0], [0, 0, 1, 0], [], []>} : vector<16x32xf32>, vector<96x32xf32>, vector<16x96xf32> -> vector<16x96xf32>
    %c0_3 = arith.constant 0 : index
    %c0_4 = arith.constant 0 : index
    %3 = vector.load %arg4[%c0_3, %c0_4] : memref<16x96xf32, #tpu.memory_space<vmem>>, vector<16x96xf32>
    tpu.vector_store %arg4[%c0_3, %c0_4], %2 {strides = array<i32>} : memref<16x96xf32, #tpu.memory_space<vmem>>, vector<16x96xf32>,
    return
  }
  func.func @transform_0(%arg0: i32, %arg1: i32) -> (i32, i32) {
    %c0_i32 = arith.constant 0 : i32
    %c0_i32_0 = arith.constant 0 : i32
    return %arg0, %c0_i32 : i32, i32
  }
  func.func @transform_1(%arg0: i32, %arg1: i32) -> (i32, i32) {
    %c0_i32 = arith.constant 0 : i32
    %c0_i32_0 = arith.constant 0 : i32
    return %arg1, %c0_i32 : i32, i32
  }
  func.func @transform_2(%arg0: i32, %arg1: i32) -> (i32, i32) {
    %c0_i32 = arith.constant 0 : i32
    return %arg0, %arg1 : i32, i32
  }
}

</mosaic_0001>

<bundles_post_ra>
// kernel: tpu_custom_call.1
= control target key start
LH: loop header
LB: loop body
LE: loop exit
PB: predicated region body
PF: predicated region fallthrough
CT: control target
= control target key end

     0   :  { %vm26_vm0 = vcmask 261120   ;;  %s332_s0 = inlined_call_operand.vmem [shape: f32[16,32], index: 0, kind: input, shape index: {}]   ;;  %s333_s1 = inlined_call_operand.vmem [shape: f32[96,32], index: 1, kind: input, shape index: {}]   ;;  %s334_s2 = inlined_call_operand.hbm [shape: f32[16,96], index: 2, kind: output, shape index: {}]  }
   0x1   :  { %v25_v0 = vld [vmem:[%s333_s1 + $0x58] sm:$0xff]  ;;  %v24_v1 = vld [vmem:[%s333_s1 + $0x50] sm:$0xff]  ;;  %v23_v2 = vld [vmem:[%s333_s1 + $0x48] sm:$0xff] }
   0x2   :  { %191 = vmatprep.subr.msk.mxu0 %vm26_vm0, %v25_v0  ;;  %v12_v3 = vld [vmem:[%s332_s0] sm:$0xff] }
   0x3   :  { %192 = vmatpush3.xpose.msk.msra.mxu0 %vm26_vm0, %v25_v0 }
   0x4   :  { %193 = vmatprep.subr.msk.mxu0 %vm26_vm0, %v24_v1 }
   0x5   :  { %7 = vsyncpa [#allocation3], 0  ;;  %215 = vmatprep.mubr.msk.f32.mxu0 %vm26_vm0, %v12_v3  ;;  %v22_v4 = vld [vmem:[%s333_s1 + $0x40] sm:$0xff]  ;;  %v21_v5 = vld [vmem:[%s333_s1 + $0x38] sm:$0xff]  ;;  %s243_s9 = smov [#allocation2]   ;;  %vm144_vm1 = vcmask 785408  }
   0x6   :  { %v20_v6 = vld [vmem:[%s333_s1 + $0x30] sm:$0xff]  ;;  %v19_v7 = vld [vmem:[%s333_s1 + $0x28] sm:$0xff]  ;;  %v18_v8 = vld [vmem:[%s333_s1 + $0x20] sm:$0xff]  ;;  %s152_s10 = sshll.u32 %s243_s9, 4  ;;  %s153_s10 = int_to_ptr.vmem [resolvable:$true] %s152_s10 }
   0x7   :  { %194 = vmatpush3.xpose.msk.msra.mxu0 %vm26_vm0, %v24_v1  ;;  %v17_v9 = vld [vmem:[%s333_s1 + $0x18] sm:$0xff]  ;;  %v16_v10 = vld [vmem:[%s333_s1 + $0x10] sm:$0xff]  ;;  %v15_v11 = vld [vmem:[%s333_s1 + $0x8] sm:$0xff]  ;;  %p226_p1 = scmp.lt.s32.totalorder %s153_s10, %s153_s10 }
   0x8   :  { %195 = vmatprep.subr.msk.mxu0 %vm26_vm0, %v23_v2  ;;  %v14_v12 = vld [vmem:[%s333_s1] sm:$0xff]  ;;  %v13_v13 = vld [vmem:[%s332_s0 + $0x8] sm:$0xff]  ;;  %s221_s1 = scalar_lea.vmem %s153_s10, 256 }
   0x9   :  { %p222_p0 = scmp.ne.s32.totalorder %s153_s10, %s221_s1  ;;  %p227_p2 = scmp.lt.s32.totalorder %s221_s1, %s221_s1 }
   0xb   :  { %196 = vmatpush3.xpose.msk.msra.mxu0 %vm26_vm0, %v23_v2  ;;  %p228_p3 = por %p227_p2, %p226_p1 }
   0xc   :  { %197 = vmatprep.subr.msk.mxu0 %vm26_vm0, %v22_v4 }
   0xd   :  { %p229_p4 = pnand %p228_p3, %p222_p0 }
   0xf   :  { %198 = vmatpush3.xpose.msk.msra.mxu0 %vm26_vm0, %v22_v4 }
  0x10   :  { %199 = vmatprep.subr.msk.mxu0 %vm26_vm0, %v21_v5 }
  0x13   :  { %200 = vmatpush3.xpose.msk.msra.mxu0 %vm26_vm0, %v21_v5 }
  0x14   :  { %201 = vmatprep.subr.msk.mxu0 %vm26_vm0, %v20_v6 }
  0x17   :  { %202 = vmatpush3.xpose.msk.msra.mxu0 %vm26_vm0, %v20_v6 }
  0x18   :  { %203 = vmatprep.subr.msk.mxu0 %vm26_vm0, %v19_v7 }
  0x1b   :  { %204 = vmatpush3.xpose.msk.msra.mxu0 %vm26_vm0, %v19_v7 }
  0x1c   :  { %205 = vmatprep.subr.msk.mxu0 %vm26_vm0, %v18_v8 }
  0x1f   :  { %206 = vmatpush3.xpose.msk.msra.mxu0 %vm26_vm0, %v18_v8 }
  0x20   :  { %207 = vmatprep.subr.msk.mxu0 %vm26_vm0, %v17_v9 }
  0x23   :  { %208 = vmatpush3.xpose.msk.msra.mxu0 %vm26_vm0, %v17_v9 }
  0x24   :  { %209 = vmatprep.subr.msk.mxu0 %vm26_vm0, %v16_v10 }
  0x27   :  { %210 = vmatpush3.xpose.msk.msra.mxu0 %vm26_vm0, %v16_v10 }
  0x28   :  { %211 = vmatprep.subr.msk.mxu0 %vm26_vm0, %v15_v11 }
  0x2b   :  { %212 = vmatpush3.xpose.msk.msra.mxu0 %vm26_vm0, %v15_v11 }
  0x2c   :  { %213 = vmatprep.subr.msk.mxu0 %vm26_vm0, %v14_v12 }
  0x2f   :  { %214 = vmatpush3.xpose.msk.msra.mxu0 %vm26_vm0, %v14_v12 }
  0x32   :  { %216 = vmatmul.mubr.msk.f32.vlgmr.msra.gmra.mxu0 %vm26_vm0, %v13_v13 }
  0xf2   :  { %v217_v14 = vpop.f32.mrf.mxu0 }
  0xf3   :  { %146 = vst.msk [vmem:[#allocation2 + $0x8] sm:$0xff] %vm144_vm1, %v217_v14 }
  0xf4   :  { %v135_v15 = vpop.f32.mrf.mxu0 }
  0xf5   :  { %145 = vst.msk [vmem:[#allocation2] sm:$0xff] %vm144_vm1, %v135_v15 }
  0xf6   :  { %232 = shalt.err (!%p229_p4)
}
  0xf7   :  { %s244_s11 = smov 128   ;;  %s245_s12 = smov 8  }
  0xf8   :  { %158 = dma.vmem_to_hbm [thread:$0]  %s153_s10, 256, %s334_s2, [#allocation3], %s244_s11, %s244_s11, %s245_s12  }
  0xf9   :  { %241 = dma.done.wait [#allocation3], 256  }
  0xfa   :  { %242 = vsyncadd [#allocation3], 4294967040 }
  0xfb   :  { %162 = vsyncpa [#allocation3], 1 }

</bundles_post_ra>
